<compile_context>
chip_gen: v7x
topology: tpu7x:2x2x1
jax: 0.10.0
libtpu: 0.0.40
codegen_flags: <defaults>
</compile_context>

<pallas_src>
import numpy as np

import jax
import jax.numpy as jnp
from jax.experimental import pallas as pl
from jax.experimental.pallas import tpu as pltpu


# ----------------------------- configuration (opt.*) ------------------------
SIGMA = 0.5
UNIT_COUNT = 32
AGE_GROUP = 4
IN_DIM = 48            # opt.latent_dim - opt.noiseSize - opt.ageSize
DIM_AGE_CON_ID = 16
REPEAT_NUM = 2
BATCH = 8

STRIDE = int((1.0 - SIGMA) * UNIT_COUNT)                                  # 16
CONV_DIM = int((AGE_GROUP - (AGE_GROUP - 1) * SIGMA) * UNIT_COUNT)        # 80
LEAKY_SLOPE = 0.01                                                        # nn.LeakyReLU default
BN_EPS = 1e-5

LANES = 128
assert CONV_DIM <= LANES and DIM_AGE_CON_ID <= LANES
assert (AGE_GROUP - 1) * STRIDE + UNIT_COUNT <= LANES

# ----------------------------- packed weight-slab layout --------------------
# All row offsets / extents are multiples of 16 so every in-kernel slice of the
# bf16 slab is sublane-tile aligned ((16,128) tiles for bf16).
_ROW_W1 = 0
_row = IN_DIM                                   # 48
_ROW_WA, _ROW_WB = [], []
for _r in range(REPEAT_NUM):                    # residual weights packed contiguously
    _ROW_WA.append(_row); _row += UNIT_COUNT
    _ROW_WB.append(_row); _row += UNIT_COUNT
_ROW_W2 = _row; _row += UNIT_COUNT
W_ROWS = ((_row + 15) // 16) * 16               # 208 for the default config

# Biases (BN-folded) stay f32 in their own tiny slab: one row per layer.
_BIAS_B1 = 0
_BIAS_A = [1 + 2 * r for r in range(REPEAT_NUM)]
_BIAS_B = [2 + 2 * r for r in range(REPEAT_NUM)]
_BIAS_B2 = 1 + 2 * REPEAT_NUM
BIAS_ROWS = 8                                   # f32 sublane tile


# ----------------------------- parameter construction -----------------------
def _linear_params(key, din, dout):
    kw, kb = jax.random.split(key)
    w = 0.02 * jax.random.normal(kw, (din, dout), jnp.float32)
    b = 0.01 * jax.random.normal(kb, (1, dout), jnp.float32)
    return w, b


def _bn_affine(key, dim):
    k1, k2, k3, k4 = jax.random.split(key, 4)
    gamma = 1.0 + 0.1 * jax.random.normal(k1, (dim,), jnp.float32)
    beta = 0.1 * jax.random.normal(k2, (dim,), jnp.float32)
    mean = 0.1 * jax.random.normal(k3, (dim,), jnp.float32)
    var = 1.0 + 0.1 * jnp.abs(jax.random.normal(k4, (dim,), jnp.float32))
    scale = gamma / jnp.sqrt(var + BN_EPS)
    shift = beta - mean * scale
    return scale.reshape(1, dim), shift.reshape(1, dim)


def build_raw_params(key):
    """Un-folded parameters (Linear + eval-mode BN affine) for the reference."""
    keys = jax.random.split(key, 4 + 4 * REPEAT_NUM)
    it = iter(keys)

    w1, b1 = _linear_params(next(it), IN_DIM, CONV_DIM)
    s1, t1 = _bn_affine(next(it), CONV_DIM)

    wa, ba, sa, ta = [], [], [], []
    wb, bb, sb, tb = [], [], [], []
    for _ in range(REPEAT_NUM):
        w, b = _linear_params(next(it), UNIT_COUNT, CONV_DIM)
        s, t = _bn_affine(next(it), CONV_DIM)
        wa.append(w); ba.append(b); sa.append(s); ta.append(t)
        w, b = _linear_params(next(it), UNIT_COUNT, CONV_DIM)
        s, t = _bn_affine(next(it), CONV_DIM)
        wb.append(w); bb.append(b); sb.append(s); tb.append(t)
    stack = lambda xs: jnp.stack(xs, axis=0)

    w2, b2 = _linear_params(next(it), UNIT_COUNT, DIM_AGE_CON_ID)
    s2, t2 = _bn_affine(next(it), DIM_AGE_CON_ID)

    return dict(
        w1=w1, b1=b1, s1=s1, t1=t1,
        wa=stack(wa), ba=stack(ba), sa=stack(sa), ta=stack(ta),
        wb=stack(wb), bb=stack(bb), sb=stack(sb), tb=stack(tb),
        w2=w2, b2=b2, s2=s2, t2=t2,
    )


def fold_and_pack(raw):
    """Fold eval-mode BN into each Linear; pack weights into one bf16 slab and
    biases into one small f32 slab."""
    def fold(w, b, s, t):
        return w * s, b * s + t

    wslab = jnp.zeros((W_ROWS, LANES), jnp.float32)
    bslab = jnp.zeros((BIAS_ROWS, LANES), jnp.float32)

    def put_w(slab, row, w):
        return slab.at[row:row + w.shape[0], :w.shape[1]].set(w)

    def put_b(slab, idx, b):
        return slab.at[idx, :b.shape[1]].set(b[0])

    w, b = fold(raw["w1"], raw["b1"], raw["s1"], raw["t1"])
    wslab = put_w(wslab, _ROW_W1, w); bslab = put_b(bslab, _BIAS_B1, b)
    for r in range(REPEAT_NUM):
        w, b = fold(raw["wa"][r], raw["ba"][r], raw["sa"][r], raw["ta"][r])
        wslab = put_w(wslab, _ROW_WA[r], w); bslab = put_b(bslab, _BIAS_A[r], b)
        w, b = fold(raw["wb"][r], raw["bb"][r], raw["sb"][r], raw["tb"][r])
        wslab = put_w(wslab, _ROW_WB[r], w); bslab = put_b(bslab, _BIAS_B[r], b)
    w, b = fold(raw["w2"], raw["b2"], raw["s2"], raw["t2"])
    wslab = put_w(wslab, _ROW_W2, w); bslab = put_b(bslab, _BIAS_B2, b)

    # bf16 weights: single-pass MXU matmuls + half the slab DMA.
    return wslab.astype(jnp.bfloat16), bslab


# ----------------------------- Pallas kernel ---------------------------------
def _aging_kernel(x_ref, oh_ref, w_ref, b_ref, out_ref):
    x = x_ref[...]                       # (B, IN_DIM)   f32
    oh = oh_ref[...]                     # (B, AGE_GROUP) f32

    # Hoist one-hot columns: broadcast once, reused by every route().
    oh_cols = [oh[:, a:a + 1] for a in range(AGE_GROUP)]

    # One (8,128) f32 vreg holding all (BN-folded) biases.
    biases = b_ref[...]

    def leaky(v):
        return jnp.where(v >= 0, v, LEAKY_SLOPE * v)

    def dense(h, w_row, k, b_idx):
        # Weight rows are 16-row-aligned static slices of the bf16 slab; the
        # lane dim is zero-padded to 128 so bias/activation padding stays 0.
        w = w_ref[w_row:w_row + k, :]                       # (k, 128) bf16
        y = jnp.dot(h.astype(jnp.bfloat16), w,
                    preferred_element_type=jnp.float32)     # f32 accumulate
        return leaky(y + biases[b_idx:b_idx + 1, :])        # bias + LeakyReLU in f32

    def route(h):
        # TaskRouter: per-sample contiguous slice == one-hot weighted sum of
        # static lane slices (VPU/XLU only; no MXU, no selection matrices).
        acc = oh_cols[0] * h[:, 0:UNIT_COUNT]
        for a in range(1, AGE_GROUP):
            s = a * STRIDE
            acc = acc + oh_cols[a] * h[:, s:s + UNIT_COUNT]
        return acc

    # conv1 (Linear + folded BN + LeakyReLU), then router
    h = dense(x, _ROW_W1, IN_DIM, _BIAS_B1)        # (B, 128); lanes >= CONV_DIM are 0
    xr = route(h)                                  # (B, UNIT_COUNT) f32

    # residual blocks
    for r in range(REPEAT_NUM):
        hA = dense(xr, _ROW_WA[r], UNIT_COUNT, _BIAS_A[r])
        x2 = route(hA)
        hB = dense(x2, _ROW_WB[r], UNIT_COUNT, _BIAS_B[r])
        xr = route(hB) + xr

    # conv2
    y = dense(xr, _ROW_W2, UNIT_COUNT, _BIAS_B2)   # (B, 128)
    out_ref[...] = y[:, 0:DIM_AGE_CON_ID]


@jax.jit
def aging_forward(x_id, onehot, w_slab, biases):
    b = x_id.shape[0]
    # No wrapper-side packing: x_id and onehot go straight to VMEM and are
    # sliced in-kernel.  Grid-free, single TensorCore (latency-bound at B=8).
    return pl.pallas_call(
        _aging_kernel,
        out_shape=jax.ShapeDtypeStruct((b, DIM_AGE_CON_ID), jnp.float32),
        in_specs=[pl.BlockSpec(memory_space=pltpu.MemorySpace.VMEM),
                  pl.BlockSpec(memory_space=pltpu.MemorySpace.VMEM),
                  pl.BlockSpec(memory_space=pltpu.MemorySpace.VMEM),
                  pl.BlockSpec(memory_space=pltpu.MemorySpace.VMEM)],
        out_specs=pl.BlockSpec(memory_space=pltpu.MemorySpace.VMEM),
    )(x_id.astype(jnp.float32), onehot.astype(jnp.float32), w_slab, biases)


# ----------------------------- pure-JAX reference ----------------------------
def reference_forward(x_id, task_ids_np, raw):
    """Un-folded Linear->BN->LeakyReLU with an explicit per-row slice router
    (matches the torch TaskRouter semantics for integer task ids)."""
    def leaky(v):
        return jnp.where(v >= 0, v, LEAKY_SLOPE * v)

    def route(h):
        rows = []
        for i in range(h.shape[0]):
            start = int(task_ids_np[i]) * STRIDE
            rows.append(h[i, start:start + UNIT_COUNT])
        return jnp.stack(rows, axis=0)

    h = leaky((x_id @ raw["w1"] + raw["b1"]) * raw["s1"] + raw["t1"])
    xr = route(h)
    for r in range(REPEAT_NUM):
        hA = leaky((xr @ raw["wa"][r] + raw["ba"][r]) * raw["sa"][r] + raw["ta"][r])
        x2 = route(hA)
        hB = leaky((x2 @ raw["wb"][r] + raw["bb"][r]) * raw["sb"][r] + raw["tb"][r])
        xr = route(hB) + xr
    return leaky((xr @ raw["w2"] + raw["b2"]) * raw["s2"] + raw["t2"])


# ----------------------------- main ------------------------------------------
if __name__ == "__main__":
    key = jax.random.PRNGKey(0)
    k_param, k_x, k_cond = jax.random.split(key, 3)

    raw = build_raw_params(k_param)
    w_slab, biases = fold_and_pack(raw)             # bf16 weights, f32 biases

    x_id = jax.random.normal(k_x, (BATCH, IN_DIM), jnp.float32)
    task_ids = jax.random.randint(k_cond, (BATCH,), 0, AGE_GROUP, jnp.int32)
    task_ids_np = np.asarray(task_ids)
    onehot = jax.nn.one_hot(task_ids, AGE_GROUP, dtype=jnp.float32)

    out = aging_forward(x_id, onehot, w_slab, biases)
    out = jax.block_until_ready(out)

    ref = reference_forward(x_id, task_ids_np, raw)
    # Tolerance reflects the intentional bf16 quantization of the weight slab
    # (kernel) vs. f32 weights in the reference.
    np.testing.assert_allclose(np.asarray(out), np.asarray(ref), rtol=2e-2, atol=5e-3)

    print("KERNEL_OK")
</pallas_src>

<mosaic_0001>
module attributes {stable_mosaic.version = 11 : i64} {
  func.func @_aging_kernel(%arg0: memref<8x48xf32, #tpu.memory_space<vmem>>, %arg1: memref<8x4xf32, #tpu.memory_space<vmem>>, %arg2: memref<208x128xbf16, #tpu.memory_space<vmem>>, %arg3: memref<8x128xf32, #tpu.memory_space<vmem>>, %arg4: memref<8x16xf32, #tpu.memory_space<vmem>>) attributes {dimension_semantics = [], scalar_prefetch = 0 : i64, scratch_operands = 0 : i64, tpu.core_type = #tpu.core_type<tc>} {
    %c0 = arith.constant 0 : index
    %c0_0 = arith.constant 0 : index
    %0 = vector.load %arg0[%c0, %c0_0] : memref<8x48xf32, #tpu.memory_space<vmem>>, vector<8x48xf32>
    %c0_1 = arith.constant 0 : index
    %c0_2 = arith.constant 0 : index
    %1 = vector.load %arg1[%c0_1, %c0_2] : memref<8x4xf32, #tpu.memory_space<vmem>>, vector<8x4xf32>
    %2 = vector.extract_strided_slice %1 {offsets = [0, 0], sizes = [8, 1], strides = [1, 1]} : vector<8x4xf32> to vector<8x1xf32>
    %3 = vector.extract_strided_slice %1 {offsets = [0, 1], sizes = [8, 1], strides = [1, 1]} : vector<8x4xf32> to vector<8x1xf32>
    %4 = vector.extract_strided_slice %1 {offsets = [0, 2], sizes = [8, 1], strides = [1, 1]} : vector<8x4xf32> to vector<8x1xf32>
    %5 = vector.extract_strided_slice %1 {offsets = [0, 3], sizes = [8, 1], strides = [1, 1]} : vector<8x4xf32> to vector<8x1xf32>
    %c0_3 = arith.constant 0 : index
    %c0_4 = arith.constant 0 : index
    %6 = vector.load %arg3[%c0_3, %c0_4] : memref<8x128xf32, #tpu.memory_space<vmem>>, vector<8x128xf32>
    %c0_5 = arith.constant 0 : index
    %c0_6 = arith.constant 0 : index
    %7 = vector.load %arg2[%c0_5, %c0_6] : memref<208x128xbf16, #tpu.memory_space<vmem>>, vector<48x128xbf16>
    %8 = arith.truncf %0 : vector<8x48xf32> to vector<8x48xbf16>
    %cst = arith.constant dense<0.000000e+00> : vector<8x128xf32>
    %9 = tpu.matmul %8, %7, %cst {dimension_numbers = #tpu.dot_dimension_numbers<[1], [0], [0], [1], [0, 0, 1, 1], [], []>} : vector<8x48xbf16>, vector<48x128xbf16>, vector<8x128xf32> -> vector<8x128xf32>
    %10 = vector.extract_strided_slice %6 {offsets = [0, 0], sizes = [1, 128], strides = [1, 1]} : vector<8x128xf32> to vector<1x128xf32>
    %11 = vector.broadcast %10 : vector<1x128xf32> to vector<8x128xf32>
    %12 = arith.addf %9, %11 : vector<8x128xf32>
    %cst_7 = arith.constant 0.000000e+00 : f32
    %13 = vector.broadcast %cst_7 : f32 to vector<8x128xf32>
    %14 = arith.cmpf oge, %12, %13 : vector<8x128xf32>
    %cst_8 = arith.constant 0.00999999977 : f32
    %15 = vector.broadcast %cst_8 : f32 to vector<8x128xf32>
    %16 = arith.mulf %15, %12 : vector<8x128xf32>
    %17 = arith.select %14, %12, %16 : vector<8x128xi1>, vector<8x128xf32>
    %18 = vector.extract_strided_slice %17 {offsets = [0, 0], sizes = [8, 32], strides = [1, 1]} : vector<8x128xf32> to vector<8x32xf32>
    %19 = vector.broadcast %2 : vector<8x1xf32> to vector<8x32xf32>
    %20 = arith.mulf %19, %18 : vector<8x32xf32>
    %21 = vector.extract_strided_slice %17 {offsets = [0, 16], sizes = [8, 32], strides = [1, 1]} : vector<8x128xf32> to vector<8x32xf32>
    %22 = vector.broadcast %3 : vector<8x1xf32> to vector<8x32xf32>
    %23 = arith.mulf %22, %21 : vector<8x32xf32>
    %24 = arith.addf %20, %23 : vector<8x32xf32>
    %25 = vector.extract_strided_slice %17 {offsets = [0, 32], sizes = [8, 32], strides = [1, 1]} : vector<8x128xf32> to vector<8x32xf32>
    %26 = vector.broadcast %4 : vector<8x1xf32> to vector<8x32xf32>
    %27 = arith.mulf %26, %25 : vector<8x32xf32>
    %28 = arith.addf %24, %27 : vector<8x32xf32>
    %29 = vector.extract_strided_slice %17 {offsets = [0, 48], sizes = [8, 32], strides = [1, 1]} : vector<8x128xf32> to vector<8x32xf32>
    %30 = vector.broadcast %5 : vector<8x1xf32> to vector<8x32xf32>
    %31 = arith.mulf %30, %29 : vector<8x32xf32>
    %32 = arith.addf %28, %31 : vector<8x32xf32>
    %c48 = arith.constant 48 : index
    %c0_9 = arith.constant 0 : index
    %33 = vector.load %arg2[%c48, %c0_9] : memref<208x128xbf16, #tpu.memory_space<vmem>>, vector<32x128xbf16>
    %34 = arith.truncf %32 : vector<8x32xf32> to vector<8x32xbf16>
    %cst_10 = arith.constant dense<0.000000e+00> : vector<8x128xf32>
    %35 = tpu.matmul %34, %33, %cst_10 {dimension_numbers = #tpu.dot_dimension_numbers<[1], [0], [0], [1], [0, 0, 1, 1], [], []>} : vector<8x32xbf16>, vector<32x128xbf16>, vector<8x128xf32> -> vector<8x128xf32>
    %36 = vector.extract_strided_slice %6 {offsets = [1, 0], sizes = [1, 128], strides = [1, 1]} : vector<8x128xf32> to vector<1x128xf32>
    %37 = vector.broadcast %36 : vector<1x128xf32> to vector<8x128xf32>
    %38 = arith.addf %35, %37 : vector<8x128xf32>
    %cst_11 = arith.constant 0.000000e+00 : f32
    %39 = vector.broadcast %cst_11 : f32 to vector<8x128xf32>
    %40 = arith.cmpf oge, %38, %39 : vector<8x128xf32>
    %cst_12 = arith.constant 0.00999999977 : f32
    %41 = vector.broadcast %cst_12 : f32 to vector<8x128xf32>
    %42 = arith.mulf %41, %38 : vector<8x128xf32>
    %43 = arith.select %40, %38, %42 : vector<8x128xi1>, vector<8x128xf32>
    %44 = vector.extract_strided_slice %43 {offsets = [0, 0], sizes = [8, 32], strides = [1, 1]} : vector<8x128xf32> to vector<8x32xf32>
    %45 = vector.broadcast %2 : vector<8x1xf32> to vector<8x32xf32>
    %46 = arith.mulf %45, %44 : vector<8x32xf32>
    %47 = vector.extract_strided_slice %43 {offsets = [0, 16], sizes = [8, 32], strides = [1, 1]} : vector<8x128xf32> to vector<8x32xf32>
    %48 = vector.broadcast %3 : vector<8x1xf32> to vector<8x32xf32>
    %49 = arith.mulf %48, %47 : vector<8x32xf32>
    %50 = arith.addf %46, %49 : vector<8x32xf32>
    %51 = vector.extract_strided_slice %43 {offsets = [0, 32], sizes = [8, 32], strides = [1, 1]} : vector<8x128xf32> to vector<8x32xf32>
    %52 = vector.broadcast %4 : vector<8x1xf32> to vector<8x32xf32>
    %53 = arith.mulf %52, %51 : vector<8x32xf32>
    %54 = arith.addf %50, %53 : vector<8x32xf32>
    %55 = vector.extract_strided_slice %43 {offsets = [0, 48], sizes = [8, 32], strides = [1, 1]} : vector<8x128xf32> to vector<8x32xf32>
    %56 = vector.broadcast %5 : vector<8x1xf32> to vector<8x32xf32>
    %57 = arith.mulf %56, %55 : vector<8x32xf32>
    %58 = arith.addf %54, %57 : vector<8x32xf32>
    %c80 = arith.constant 80 : index
    %c0_13 = arith.constant 0 : index
    %59 = vector.load %arg2[%c80, %c0_13] : memref<208x128xbf16, #tpu.memory_space<vmem>>, vector<32x128xbf16>
    %60 = arith.truncf %58 : vector<8x32xf32> to vector<8x32xbf16>
    %cst_14 = arith.constant dense<0.000000e+00> : vector<8x128xf32>
    %61 = tpu.matmul %60, %59, %cst_14 {dimension_numbers = #tpu.dot_dimension_numbers<[1], [0], [0], [1], [0, 0, 1, 1], [], []>} : vector<8x32xbf16>, vector<32x128xbf16>, vector<8x128xf32> -> vector<8x128xf32>
    %62 = vector.extract_strided_slice %6 {offsets = [2, 0], sizes = [1, 128], strides = [1, 1]} : vector<8x128xf32> to vector<1x128xf32>
    %63 = vector.broadcast %62 : vector<1x128xf32> to vector<8x128xf32>
    %64 = arith.addf %61, %63 : vector<8x128xf32>
    %cst_15 = arith.constant 0.000000e+00 : f32
    %65 = vector.broadcast %cst_15 : f32 to vector<8x128xf32>
    %66 = arith.cmpf oge, %64, %65 : vector<8x128xf32>
    %cst_16 = arith.constant 0.00999999977 : f32
    %67 = vector.broadcast %cst_16 : f32 to vector<8x128xf32>
    %68 = arith.mulf %67, %64 : vector<8x128xf32>
    %69 = arith.select %66, %64, %68 : vector<8x128xi1>, vector<8x128xf32>
    %70 = vector.extract_strided_slice %69 {offsets = [0, 0], sizes = [8, 32], strides = [1, 1]} : vector<8x128xf32> to vector<8x32xf32>
    %71 = vector.broadcast %2 : vector<8x1xf32> to vector<8x32xf32>
    %72 = arith.mulf %71, %70 : vector<8x32xf32>
    %73 = vector.extract_strided_slice %69 {offsets = [0, 16], sizes = [8, 32], strides = [1, 1]} : vector<8x128xf32> to vector<8x32xf32>
    %74 = vector.broadcast %3 : vector<8x1xf32> to vector<8x32xf32>
    %75 = arith.mulf %74, %73 : vector<8x32xf32>
    %76 = arith.addf %72, %75 : vector<8x32xf32>
    %77 = vector.extract_strided_slice %69 {offsets = [0, 32], sizes = [8, 32], strides = [1, 1]} : vector<8x128xf32> to vector<8x32xf32>
    %78 = vector.broadcast %4 : vector<8x1xf32> to vector<8x32xf32>
    %79 = arith.mulf %78, %77 : vector<8x32xf32>
    %80 = arith.addf %76, %79 : vector<8x32xf32>
    %81 = vector.extract_strided_slice %69 {offsets = [0, 48], sizes = [8, 32], strides = [1, 1]} : vector<8x128xf32> to vector<8x32xf32>
    %82 = vector.broadcast %5 : vector<8x1xf32> to vector<8x32xf32>
    %83 = arith.mulf %82, %81 : vector<8x32xf32>
    %84 = arith.addf %80, %83 : vector<8x32xf32>
    %85 = arith.addf %84, %32 : vector<8x32xf32>
    %c112 = arith.constant 112 : index
    %c0_17 = arith.constant 0 : index
    %86 = vector.load %arg2[%c112, %c0_17] : memref<208x128xbf16, #tpu.memory_space<vmem>>, vector<32x128xbf16>
    %87 = arith.truncf %85 : vector<8x32xf32> to vector<8x32xbf16>
    %cst_18 = arith.constant dense<0.000000e+00> : vector<8x128xf32>
    %88 = tpu.matmul %87, %86, %cst_18 {dimension_numbers = #tpu.dot_dimension_numbers<[1], [0], [0], [1], [0, 0, 1, 1], [], []>} : vector<8x32xbf16>, vector<32x128xbf16>, vector<8x128xf32> -> vector<8x128xf32>
    %89 = vector.extract_strided_slice %6 {offsets = [3, 0], sizes = [1, 128], strides = [1, 1]} : vector<8x128xf32> to vector<1x128xf32>
    %90 = vector.broadcast %89 : vector<1x128xf32> to vector<8x128xf32>
    %91 = arith.addf %88, %90 : vector<8x128xf32>
    %cst_19 = arith.constant 0.000000e+00 : f32
    %92 = vector.broadcast %cst_19 : f32 to vector<8x128xf32>
    %93 = arith.cmpf oge, %91, %92 : vector<8x128xf32>
    %cst_20 = arith.constant 0.00999999977 : f32
    %94 = vector.broadcast %cst_20 : f32 to vector<8x128xf32>
    %95 = arith.mulf %94, %91 : vector<8x128xf32>
    %96 = arith.select %93, %91, %95 : vector<8x128xi1>, vector<8x128xf32>
    %97 = vector.extract_strided_slice %96 {offsets = [0, 0], sizes = [8, 32], strides = [1, 1]} : vector<8x128xf32> to vector<8x32xf32>
    %98 = vector.broadcast %2 : vector<8x1xf32> to vector<8x32xf32>
    %99 = arith.mulf %98, %97 : vector<8x32xf32>
    %100 = vector.extract_strided_slice %96 {offsets = [0, 16], sizes = [8, 32], strides = [1, 1]} : vector<8x128xf32> to vector<8x32xf32>
    %101 = vector.broadcast %3 : vector<8x1xf32> to vector<8x32xf32>
    %102 = arith.mulf %101, %100 : vector<8x32xf32>
    %103 = arith.addf %99, %102 : vector<8x32xf32>
    %104 = vector.extract_strided_slice %96 {offsets = [0, 32], sizes = [8, 32], strides = [1, 1]} : vector<8x128xf32> to vector<8x32xf32>
    %105 = vector.broadcast %4 : vector<8x1xf32> to vector<8x32xf32>
    %106 = arith.mulf %105, %104 : vector<8x32xf32>
    %107 = arith.addf %103, %106 : vector<8x32xf32>
    %108 = vector.extract_strided_slice %96 {offsets = [0, 48], sizes = [8, 32], strides = [1, 1]} : vector<8x128xf32> to vector<8x32xf32>
    %109 = vector.broadcast %5 : vector<8x1xf32> to vector<8x32xf32>
    %110 = arith.mulf %109, %108 : vector<8x32xf32>
    %111 = arith.addf %107, %110 : vector<8x32xf32>
    %c144 = arith.constant 144 : index
    %c0_21 = arith.constant 0 : index
    %112 = vector.load %arg2[%c144, %c0_21] : memref<208x128xbf16, #tpu.memory_space<vmem>>, vector<32x128xbf16>
    %113 = arith.truncf %111 : vector<8x32xf32> to vector<8x32xbf16>
    %cst_22 = arith.constant dense<0.000000e+00> : vector<8x128xf32>
    %114 = tpu.matmul %113, %112, %cst_22 {dimension_numbers = #tpu.dot_dimension_numbers<[1], [0], [0], [1], [0, 0, 1, 1], [], []>} : vector<8x32xbf16>, vector<32x128xbf16>, vector<8x128xf32> -> vector<8x128xf32>
    %115 = vector.extract_strided_slice %6 {offsets = [4, 0], sizes = [1, 128], strides = [1, 1]} : vector<8x128xf32> to vector<1x128xf32>
    %116 = vector.broadcast %115 : vector<1x128xf32> to vector<8x128xf32>
    %117 = arith.addf %114, %116 : vector<8x128xf32>
    %cst_23 = arith.constant 0.000000e+00 : f32
    %118 = vector.broadcast %cst_23 : f32 to vector<8x128xf32>
    %119 = arith.cmpf oge, %117, %118 : vector<8x128xf32>
    %cst_24 = arith.constant 0.00999999977 : f32
    %120 = vector.broadcast %cst_24 : f32 to vector<8x128xf32>
    %121 = arith.mulf %120, %117 : vector<8x128xf32>
    %122 = arith.select %119, %117, %121 : vector<8x128xi1>, vector<8x128xf32>
    %123 = vector.extract_strided_slice %122 {offsets = [0, 0], sizes = [8, 32], strides = [1, 1]} : vector<8x128xf32> to vector<8x32xf32>
    %124 = vector.broadcast %2 : vector<8x1xf32> to vector<8x32xf32>
    %125 = arith.mulf %124, %123 : vector<8x32xf32>
    %126 = vector.extract_strided_slice %122 {offsets = [0, 16], sizes = [8, 32], strides = [1, 1]} : vector<8x128xf32> to vector<8x32xf32>
    %127 = vector.broadcast %3 : vector<8x1xf32> to vector<8x32xf32>
    %128 = arith.mulf %127, %126 : vector<8x32xf32>
    %129 = arith.addf %125, %128 : vector<8x32xf32>
    %130 = vector.extract_strided_slice %122 {offsets = [0, 32], sizes = [8, 32], strides = [1, 1]} : vector<8x128xf32> to vector<8x32xf32>
    %131 = vector.broadcast %4 : vector<8x1xf32> to vector<8x32xf32>
    %132 = arith.mulf %131, %130 : vector<8x32xf32>
    %133 = arith.addf %129, %132 : vector<8x32xf32>
    %134 = vector.extract_strided_slice %122 {offsets = [0, 48], sizes = [8, 32], strides = [1, 1]} : vector<8x128xf32> to vector<8x32xf32>
    %135 = vector.broadcast %5 : vector<8x1xf32> to vector<8x32xf32>
    %136 = arith.mulf %135, %134 : vector<8x32xf32>
    %137 = arith.addf %133, %136 : vector<8x32xf32>
    %138 = arith.addf %137, %85 : vector<8x32xf32>
    %c176 = arith.constant 176 : index
    %c0_25 = arith.constant 0 : index
    %139 = vector.load %arg2[%c176, %c0_25] : memref<208x128xbf16, #tpu.memory_space<vmem>>, vector<32x128xbf16>
    %140 = arith.truncf %138 : vector<8x32xf32> to vector<8x32xbf16>
    %cst_26 = arith.constant dense<0.000000e+00> : vector<8x128xf32>
    %141 = tpu.matmul %140, %139, %cst_26 {dimension_numbers = #tpu.dot_dimension_numbers<[1], [0], [0], [1], [0, 0, 1, 1], [], []>} : vector<8x32xbf16>, vector<32x128xbf16>, vector<8x128xf32> -> vector<8x128xf32>
    %142 = vector.extract_strided_slice %6 {offsets = [5, 0], sizes = [1, 128], strides = [1, 1]} : vector<8x128xf32> to vector<1x128xf32>
    %143 = vector.broadcast %142 : vector<1x128xf32> to vector<8x128xf32>
    %144 = arith.addf %141, %143 : vector<8x128xf32>
    %cst_27 = arith.constant 0.000000e+00 : f32
    %145 = vector.broadcast %cst_27 : f32 to vector<8x128xf32>
    %146 = arith.cmpf oge, %144, %145 : vector<8x128xf32>
    %cst_28 = arith.constant 0.00999999977 : f32
    %147 = vector.broadcast %cst_28 : f32 to vector<8x128xf32>
    %148 = arith.mulf %147, %144 : vector<8x128xf32>
    %149 = arith.select %146, %144, %148 : vector<8x128xi1>, vector<8x128xf32>
    %150 = vector.extract_strided_slice %149 {offsets = [0, 0], sizes = [8, 16], strides = [1, 1]} : vector<8x128xf32> to vector<8x16xf32>
    %c0_29 = arith.constant 0 : index
    %c0_30 = arith.constant 0 : index
    %151 = vector.load %arg4[%c0_29, %c0_30] : memref<8x16xf32, #tpu.memory_space<vmem>>, vector<8x16xf32>
    tpu.vector_store %arg4[%c0_29, %c0_30], %150 {strides = array<i32>} : memref<8x16xf32, #tpu.memory_space<vmem>>, vector<8x16xf32>,
    return
  }
}

</mosaic_0001>

<bundles_post_ra>
// kernel: aging_forward.1
= control target key start
LH: loop header
LB: loop body
LE: loop exit
PB: predicated region body
PF: predicated region fallthrough
CT: control target
= control target key end

     0   :  { %9 = vsyncpa [#allocation3], 0  ;;  %s911_s0 = inlined_call_operand.vmem [shape: f32[8,48], index: 0, kind: input, shape index: {}]   ;;  %s912_s1 = inlined_call_operand.vmem [shape: f32[8,4], index: 1, kind: input, shape index: {}]   ;;  %s913_s2 = inlined_call_operand.hbm [shape: bf16[208,128], index: 2, kind: input, shape index: {}]   ;;  %s914_s3 = inlined_call_operand.vmem [shape: f32[8,128], index: 3, kind: input, shape index: {}]   ;;  %s915_s4 = inlined_call_operand.hbm [shape: f32[8,16], index: 4, kind: output, shape index: {}]  }
   0x1   :  { %10 = vsyncpa [#allocation4], 0  ;;  %s746_s15 = smov [#allocation2]   ;;  %s698_s19 = scalar_lea.hbm %s913_s2, 1664 }
   0x2   :  { %s20_s16 = sshll.u32 %s746_s15, 4  ;;  %p699_p0 = scmp.ne.s32.totalorder %s913_s2, %s698_s19  ;;  %s21_s16 = int_to_ptr.vmem [resolvable:$true] %s20_s16 }
   0x3   :  { %p702_p1 = scmp.lt.u32.totalorder %s698_s19, %s913_s2 }
   0x5   :  { %p704_p2 = pnand %p702_p1, %p699_p0 }
   0x7   :  { %707 = shalt.err (!%p704_p2)
}
   0x8   :  { %s708_s24 = scalar_lea.vmem %s21_s16, 1664  ;;  %p713_p4 = scmp.lt.s32.totalorder %s21_s16, %s21_s16 }
   0x9   :  { %p709_p3 = scmp.ne.s32.totalorder %s21_s16, %s708_s24  ;;  %p714_p5 = scmp.lt.s32.totalorder %s708_s24, %s708_s24 }
   0xb   :  { %p715_p6 = por %p714_p5, %p713_p4 }
   0xd   :  { %p716_p7 = pnand %p715_p6, %p709_p3 }
   0xf   :  { %719 = shalt.err (!%p716_p7)
}
  0x10   :  { %s747_s25 = smov 64   ;;  %s748_s26 = smov 4  }
  0x11   :  { %26 = dma.hbm_to_vmem [thread:$0]  %s913_s2, 1664, %s21_s16, [#allocation3], %s747_s25, %s747_s25, %s748_s26  }
  0x12   :  { %742 = dma.done.wait [#allocation3], 1664  }
  0x13   :  { %743 = vsyncadd [#allocation3], 4294965632  ;;  %v749_v0 = vmov 0.0   ;;  %vm750_vm0 = vmmov 0   ;;  %v751_v1 = vmov 3   ;;  %v752_v2 = vmov 1  }
  0x14   :  { %617 = vmatprep.subr.bf16.mxu0 %v749_v0  ;;  %623 = vmatprep.mubr.msk.bf16.mxu0 %vm750_vm0, %v749_v0  ;;  %v685_v3 = vld [vmem:[#allocation2] sm:$0xff]   ;;  %v686_v4 = vld [vmem:[#allocation2 + $0x8] sm:$0xff]   ;;  %v687_v6 = vld [vmem:[#allocation2 + $0x10] sm:$0xff]   ;;  %v753_v8 = vmov 0   ;;  %v754_v9 = vmov 2   ;;  %vm65_vm1 = vcmask 392192   ;;  %v43_v11 = vlaneseq }
  0x15   :  { %682 = vset.pattern.permute.xlu1 %v751_v1  ;;  %680 = vset.pattern.permute.xlu0 %v752_v2  ;;  %v34_v5 = vld [vmem:[%s912_s1] sm:$0xff]  ;;  %v688_v15 = vld [vmem:[#allocation2 + $0x18] sm:$0xff]   ;;  %s756_s6 = smov 112   ;;  %s757_s7 = smov 80   ;;  %vm169_vm3 = vcmask 261120   ;;  %v690_v41 = vld [vmem:[#allocation2 + $0x28] sm:$0xff]  }
  0x16   :  { %627 = vmatprep.subr.bf16.mxu1 %v749_v0  ;;  %631 = vmatprep.mubr.msk.bf16.mxu1 %vm750_vm0, %v749_v0  ;;  %v33_v7 = vld [vmem:[%s911_s0] sm:$0xff]  ;;  %v813_v12 = vshrl.u32 %v43_v11, 7  ;;  %v691_v43 = vld [vmem:[#allocation2 + $0x30] sm:$0xff]   ;;  %v692_v63 = vld [vmem:[#allocation2 + $0x38] sm:$0xff]   ;;  %s758_s8 = smov [#allocation5]   ;;  %vm562_vm9 = vcmask 130048  }
  0x17   :  { %618 = vmatpush3.bf16.msra.mxu0 %v685_v3  ;;  %139 = vperm.xlu1 %682, %v34_v5   ;;  %v42_v10 = vpack.c.bf16 %v33_v7, %v33_v7  ;;  %v819_v14 = vld [vmem:[%s914_s3] sm:$0xff]  ;;  %s755_s3 = smov 96   ;;  %s570_s9 = sshll.u32 %s758_s8, 4  ;;  %s571_s9 = int_to_ptr.vmem [resolvable:$true] %s570_s9 }
  0x18   :  { %619 = vmatprep.subr.bf16.mxu0 %v749_v0  ;;  %119 = vperm.xlu0 %680, %v34_v5   ;;  %v45_v13 = vsub.s32 0, %v813_v12  ;;  %v689_v18 = vld [vmem:[#allocation2 + $0x20] sm:$0xff]   ;;  %v155_v40 = vsub.s32 1, %v813_v12  ;;  %v242_v62 = vsub.s32 2, %v813_v12  ;;  %s720_s10 = scalar_lea.vmem %s571_s9, 128  ;;  %p725_p9 = scmp.lt.s32.totalorder %s571_s9, %s571_s9 }
  0x19   :  { %628 = vmatpush3.bf16.msra.mxu1 %v688_v15  ;;  %v693_v3 = vld [vmem:[#allocation2 + $0x40] sm:$0xff]   ;;  %p721_p8 = scmp.ne.s32.totalorder %s571_s9, %s720_s10  ;;  %p726_p10 = scmp.lt.s32.totalorder %s720_s10, %s720_s10 }
  0x1a   :  { %v46_v16 = vrot.slane %v819_v14, %v45_v13  ;;  %629 = vmatprep.subr.bf16.mxu1 %v749_v0  ;;  %v156_v42 = vrot.slane %v819_v14, %v155_v40 }
  0x1b   :  { %620 = vmatpush3.bf16.msra.mxu0 %v686_v4  ;;  %683 = vset.pattern.permute.xlu1 %v753_v8  ;;  %p727_p11 = por %p726_p10, %p725_p9 }
  0x1c   :  { %621 = vmatprep.subr.bf16.mxu0 %v749_v0  ;;  %681 = vset.pattern.permute.xlu0 %v754_v9 }
  0x1d   :  { %114 = vperm.xlu1 %683, %v34_v5   ;;  %129 = vperm.xlu0 %681, %v34_v5   ;;  %p728_p12 = pnand %p727_p11, %p721_p8 }
  0x1e   :  { %630 = vmatpush3.bf16.msra.mxu1 %v689_v18 }
  0x1f   :  { %622 = vmatpush3.bf16.msra.mxu0 %v687_v6  ;;  %635 = vmatprep.subr.bf16.mxu1 %v749_v0 }
  0x20   :  { %643 = vmatprep.subr.bf16.mxu0 %v749_v0 }
  0x21   :  { %684 = vset.pattern.permute.xlu0 %v751_v1  ;;  %v243_v1 = vrot.slane %v819_v14, %v242_v62 }
  0x22   :  { %624 = vmatmul.mubr.msk.bf16.vlgmr.msra.gmra.mrb[0].mxu0 %vm65_vm1, %v42_v10 }
  0x23   :  { %647 = vmatprep.mubr.msk.bf16.mxu0 %vm750_vm0, %v749_v0  ;;  %644 = vmatpush3.bf16.msra.mxu0 %v692_v63 }
  0x24   :  { %645 = vmatprep.subr.bf16.mxu0 %v749_v0 }
  0x27   :  { %646 = vmatpush3.bf16.msra.mxu0 %v693_v3 }
  0x28   :  { %659 = vmatprep.subr.bf16.mxu0 %v749_v0 }
  0x96   :  { %v832_v29 = vpop.permute.xlu1 %139 }
  0x97   :  { %v822_v17 = vpop.permute.xlu0 %119 }
  0x9c   :  { %v826_v25 = vpop.permute.xlu0 %129  ;;  %v836_v31 = vpop.permute.xlu1 %114 }
  0xf5   :  { %v103_v19 = vpop.f32.mrb[0].mxu0 }
  0xf6   :  { %v104_v20 = vadd.f32 %v103_v19, %v46_v16  ;;  %v625_v21 = vpop.f32.mrb[1].mxu0 }
  0xf7   :  { %v106_v22 = vpop.f32.mrb[2].mxu0 }
  0xf8   :  { %vm109_vm2 = vcmp.ge.f32.partialorder %v104_v20, 0.0  ;;  %v110_v23 = vmul.f32 0.01, %v104_v20  ;;  %v626_v24 = vpop.f32.mrb[3].mxu0 }
  0xfa   :  { %v111_v26 = vsel %vm109_vm2, %v104_v20, %v110_v23 }
  0xfb   :  { %v132_v27 = vmul.f32 %v826_v25, %v111_v26  ;;  %v122_v28 = vmul.f32 %v822_v17, %v111_v26  ;;  %v142_v30 = vmul.f32 %v832_v29, %v111_v26  ;;  %v117_v32 = vmul.f32 %v836_v31, %v111_v26 }
  0xfc   :  { %v329_v26 = vsub.s32 3, %v813_v12 }
  0xfd   :  { %134 = vrot.lane.b32.xlu0 %v132_v27, %s755_s3  ;;  %124 = vrot.lane.b32.xlu1 %v122_v28, %s756_s6  ;;  %v694_v27 = vld [vmem:[#allocation2 + $0x48] sm:$0xff]  }
  0xfe   :  { %v330_v28 = vrot.slane %v819_v14, %v329_v26 }
 0x101   :  { %144 = vrot.lane.b32.xlu1 %v142_v30, %s757_s7  ;;  %v695_v30 = vld [vmem:[#allocation2 + $0x50] sm:$0xff]  }
 0x16f   :  { %v125_v33 = vpop.permute.xlu1 %124  ;;  %v135_v35 = vpop.permute.xlu0 %134 }
 0x170   :  { %v127_v34 = vadd.f32 %v125_v33, %v117_v32 }
 0x172   :  { %v137_v36 = vadd.f32 %v135_v35, %v127_v34 }
 0x173   :  { %v145_v37 = vpop.permute.xlu1 %144 }
 0x174   :  { %v839_v38 = vadd.f32 %v145_v37, %v137_v36 }
 0x176   :  { %v152_v39 = vpack.c.bf16 %v839_v38, %v839_v38 }
 0x178   :  { %632 = vmatmul.mubr.msk.bf16.vlgmr.msra.gmra.mrb[0].mxu1 %vm169_vm3, %v152_v39 }
 0x179   :  { %639 = vmatprep.mubr.msk.bf16.mxu1 %vm750_vm0, %v749_v0  ;;  %636 = vmatpush3.bf16.msra.mxu1 %v690_v41 }
 0x17a   :  { %637 = vmatprep.subr.bf16.mxu1 %v749_v0 }
 0x17d   :  { %638 = vmatpush3.bf16.msra.mxu1 %v691_v43 }
 0x17e   :  { %651 = vmatprep.subr.bf16.mxu1 %v749_v0 }
 0x24b   :  { %v207_v44 = vpop.f32.mrb[0].mxu1 }
 0x24c   :  { %v208_v45 = vadd.f32 %v207_v44, %v156_v42  ;;  %v633_v46 = vpop.f32.mrb[1].mxu1 }
 0x24d   :  { %v210_v47 = vpop.f32.mrb[2].mxu1 }
 0x24e   :  { %vm213_vm4 = vcmp.ge.f32.partialorder %v208_v45, 0.0  ;;  %v214_v48 = vmul.f32 0.01, %v208_v45  ;;  %v634_v49 = vpop.f32.mrb[3].mxu1 }
 0x250   :  { %v215_v50 = vsel %vm213_vm4, %v208_v45, %v214_v48 }
 0x251   :  { %v223_v51 = vmul.f32 %v215_v50, %v826_v25  ;;  %v217_v52 = vmul.f32 %v215_v50, %v822_v17  ;;  %v229_v53 = vmul.f32 %v215_v50, %v832_v29  ;;  %v216_v54 = vmul.f32 %v215_v50, %v836_v31 }
 0x252   :  { %v415_v50 = vsub.s32 4, %v813_v12 }
 0x253   :  { %225 = vrot.lane.b32.xlu1 %v223_v51, %s755_s3  ;;  %219 = vrot.lane.b32.xlu0 %v217_v52, %s756_s6  ;;  %v696_v51 = vld [vmem:[#allocation2 + $0x58] sm:$0xff]  }
 0x254   :  { %v416_v52 = vrot.slane %v819_v14, %v415_v50 }
 0x257   :  { %231 = vrot.lane.b32.xlu0 %v229_v53, %s757_s7 }
 0x2c5   :  { %v220_v55 = vpop.permute.xlu0 %219  ;;  %v226_v57 = vpop.permute.xlu1 %225 }
 0x2c6   :  { %v222_v56 = vadd.f32 %v220_v55, %v216_v54  ;;  %v697_v54 = vld [vmem:[#allocation2 + $0x60] sm:$0xff]  }
 0x2c8   :  { %v228_v58 = vadd.f32 %v226_v57, %v222_v56 }
 0x2c9   :  { %v232_v59 = vpop.permute.xlu0 %231 }
 0x2ca   :  { %v234_v60 = vadd.f32 %v232_v59, %v228_v58 }
 0x2cc   :  { %v239_v61 = vpack.c.bf16 %v234_v60, %v234_v60 }
 0x2ce   :  { %640 = vmatmul.mubr.msk.bf16.vlgmr.msra.gmra.mrb[4].mxu1 %vm169_vm3, %v239_v61 }
 0x2cf   :  { %655 = vmatprep.mubr.msk.bf16.mxu1 %vm750_vm0, %v749_v0  ;;  %652 = vmatpush3.bf16.msra.mxu1 %v694_v27 }
 0x2d0   :  { %653 = vmatprep.subr.bf16.mxu1 %v749_v0 }
 0x2d3   :  { %654 = vmatpush3.bf16.msra.mxu1 %v695_v30 }
 0x3a1   :  { %v293_v2 = vpop.f32.mrb[4].mxu1 }
 0x3a2   :  { %v294_v4 = vadd.f32 %v293_v2, %v243_v1  ;;  %v641_v5 = vpop.f32.mrb[5].mxu1 }
 0x3a3   :  { %v296_v6 = vpop.f32.mrb[6].mxu1 }
 0x3a4   :  { %vm299_vm5 = vcmp.ge.f32.partialorder %v294_v4, 0.0  ;;  %v300_v7 = vmul.f32 0.01, %v294_v4  ;;  %v642_v8 = vpop.f32.mrb[7].mxu1 }
 0x3a6   :  { %v301_v9 = vsel %vm299_vm5, %v294_v4, %v300_v7 }
 0x3a7   :  { %v309_v10 = vmul.f32 %v301_v9, %v826_v25  ;;  %v303_v11 = vmul.f32 %v301_v9, %v822_v17  ;;  %v315_v13 = vmul.f32 %v301_v9, %v832_v29  ;;  %v302_v15 = vmul.f32 %v301_v9, %v836_v31 }
 0x3a9   :  { %311 = vrot.lane.b32.xlu0 %v309_v10, %s755_s3  ;;  %305 = vrot.lane.b32.xlu1 %v303_v11, %s756_s6 }
 0x3ad   :  { %317 = vrot.lane.b32.xlu1 %v315_v13, %s757_s7 }
 0x41b   :  { %v306_v16 = vpop.permute.xlu1 %305  ;;  %v312_v19 = vpop.permute.xlu0 %311 }
 0x41c   :  { %v308_v18 = vadd.f32 %v306_v16, %v302_v15 }
 0x41e   :  { %v314_v20 = vadd.f32 %v312_v19, %v308_v18 }
 0x41f   :  { %v318_v21 = vpop.permute.xlu1 %317 }
 0x420   :  { %v320_v22 = vadd.f32 %v318_v21, %v314_v20 }
 0x422   :  { %v321_v23 = vadd.f32 %v320_v22, %v839_v38 }
 0x424   :  { %v326_v24 = vpack.c.bf16 %v321_v23, %v321_v23 }
 0x426   :  { %648 = vmatmul.mubr.msk.bf16.vlgmr.msra.gmra.mrb[4].mxu0 %vm169_vm3, %v326_v24 }
 0x427   :  { %663 = vmatprep.mubr.msk.bf16.mxu0 %vm750_vm0, %v749_v0  ;;  %660 = vmatpush3.bf16.msra.mxu0 %v696_v51 }
 0x428   :  { %661 = vmatprep.subr.bf16.mxu0 %v749_v0 }
 0x42b   :  { %662 = vmatpush3.bf16.msra.mxu0 %v697_v54 }
 0x4f9   :  { %v380_v32 = vpop.f32.mrb[4].mxu0 }
 0x4fa   :  { %v381_v33 = vadd.f32 %v380_v32, %v330_v28  ;;  %v649_v34 = vpop.f32.mrb[5].mxu0 }
 0x4fb   :  { %v383_v35 = vpop.f32.mrb[6].mxu0 }
 0x4fc   :  { %vm386_vm6 = vcmp.ge.f32.partialorder %v381_v33, 0.0  ;;  %v387_v36 = vmul.f32 0.01, %v381_v33  ;;  %v650_v37 = vpop.f32.mrb[7].mxu0 }
 0x4fe   :  { %v388_v38 = vsel %vm386_vm6, %v381_v33, %v387_v36 }
 0x4ff   :  { %v396_v39 = vmul.f32 %v388_v38, %v826_v25  ;;  %v390_v40 = vmul.f32 %v388_v38, %v822_v17  ;;  %v402_v41 = vmul.f32 %v388_v38, %v832_v29  ;;  %v389_v42 = vmul.f32 %v388_v38, %v836_v31 }
 0x501   :  { %398 = vrot.lane.b32.xlu1 %v396_v39, %s755_s3  ;;  %392 = vrot.lane.b32.xlu0 %v390_v40, %s756_s6 }
 0x505   :  { %404 = vrot.lane.b32.xlu0 %v402_v41, %s757_s7 }
 0x573   :  { %v393_v43 = vpop.permute.xlu0 %392  ;;  %v399_v45 = vpop.permute.xlu1 %398 }
 0x574   :  { %v395_v44 = vadd.f32 %v393_v43, %v389_v42 }
 0x576   :  { %v401_v46 = vadd.f32 %v399_v45, %v395_v44 }
 0x577   :  { %v405_v47 = vpop.permute.xlu0 %404 }
 0x578   :  { %v407_v48 = vadd.f32 %v405_v47, %v401_v46 }
 0x57a   :  { %v412_v49 = vpack.c.bf16 %v407_v48, %v407_v48 }
 0x57c   :  { %656 = vmatmul.mubr.msk.bf16.vlgmr.msra.gmra.mrb[8].mxu1 %vm169_vm3, %v412_v49 }
 0x64f   :  { %v466_v53 = vpop.f32.mrb[8].mxu1 }
 0x650   :  { %v467_v55 = vadd.f32 %v466_v53, %v416_v52  ;;  %v657_v56 = vpop.f32.mrb[9].mxu1 }
 0x651   :  { %v469_v57 = vpop.f32.mrb[10].mxu1 }
 0x652   :  { %vm472_vm7 = vcmp.ge.f32.partialorder %v467_v55, 0.0  ;;  %v473_v58 = vmul.f32 0.01, %v467_v55  ;;  %v658_v59 = vpop.f32.mrb[11].mxu1 }
 0x654   :  { %v474_v60 = vsel %vm472_vm7, %v467_v55, %v473_v58 }
 0x655   :  { %v482_v61 = vmul.f32 %v474_v60, %v826_v25  ;;  %v476_v62 = vmul.f32 %v474_v60, %v822_v17  ;;  %v488_v0 = vmul.f32 %v474_v60, %v832_v29  ;;  %v475_v63 = vmul.f32 %v474_v60, %v836_v31 }
 0x656   :  { %v502_v17 = vsub.s32 5, %v813_v12 }
 0x657   :  { %484 = vrot.lane.b32.xlu0 %v482_v61, %s755_s3  ;;  %478 = vrot.lane.b32.xlu1 %v476_v62, %s756_s6 }
 0x658   :  { %v503_v8 = vrot.slane %v819_v14, %v502_v17 }
 0x65b   :  { %490 = vrot.lane.b32.xlu1 %v488_v0, %s757_s7 }
 0x6c9   :  { %v479_v1 = vpop.permute.xlu1 %478  ;;  %v485_v3 = vpop.permute.xlu0 %484 }
 0x6ca   :  { %v481_v2 = vadd.f32 %v479_v1, %v475_v63 }
 0x6cc   :  { %v487_v4 = vadd.f32 %v485_v3, %v481_v2 }
 0x6cd   :  { %v491_v5 = vpop.permute.xlu1 %490 }
 0x6ce   :  { %v493_v6 = vadd.f32 %v491_v5, %v487_v4 }
 0x6d0   :  { %v494_v7 = vadd.f32 %v493_v6, %v321_v23 }
 0x6d2   :  { %v499_v25 = vpack.c.bf16 %v494_v7, %v494_v7 }
 0x6d4   :  { %664 = vmatmul.mubr.msk.bf16.vlgmr.msra.gmra.mrb[8].mxu0 %vm169_vm3, %v499_v25 }
 0x7a7   :  { %v553_v9 = vpop.f32.mrb[8].mxu0 }
 0x7a8   :  { %v554_v29 = vadd.f32 %v553_v9, %v503_v8  ;;  %v665_v10 = vpop.f32.mrb[9].mxu0 }
 0x7a9   :  { %v556_v31 = vpop.f32.mrb[10].mxu0 }
 0x7aa   :  { %vm559_vm8 = vcmp.ge.f32.partialorder %v554_v29, 0.0  ;;  %v560_v11 = vmul.f32 0.01, %v554_v29  ;;  %v666_v13 = vpop.f32.mrb[11].mxu0 }
 0x7ac   :  { %v561_v15 = vsel %vm559_vm8, %v554_v29, %v560_v11 }
 0x7ad   :  { %563 = vst.msk [vmem:[#allocation5] sm:$0xff] %vm562_vm9, %v561_v15 }
 0x7ae   :  { %731 = shalt.err (!%p728_p12)
}
 0x7af   :  { %s732_s13 = scalar_lea.hbm %s915_s4, 128 }
 0x7b0   :  { %p733_p13 = scmp.ne.s32.totalorder %s915_s4, %s732_s13  ;;  %p736_p0 = scmp.lt.u32.totalorder %s732_s13, %s915_s4 }
 0x7b2   :  { %p738_p1 = pnand %p736_p0, %p733_p13 }
 0x7b4   :  { %741 = shalt.err (!%p738_p1)
}
 0x7b5   :  { %573 = dma.vmem_to_hbm [thread:$0]  %s571_s9, 128, %s915_s4, [#allocation4]  }
 0x7b6   :  { %744 = dma.done.wait [#allocation4], 128  }
 0x7b7   :  { %745 = vsyncadd [#allocation4], 4294967168 }
 0x7b8   :  { %577 = vsyncpa [#allocation3], 1 }
 0x7b9   :  { %578 = vsyncpa [#allocation4], 1 }

</bundles_post_ra>
